<compile_context>
chip_gen: v6e
topology: v6e:2x2x1
jax: 0.10.0
libtpu: 0.0.40
codegen_flags: <defaults>
</compile_context>

<pallas_src>
import math

import jax
import jax.numpy as jnp
from jax.experimental import pallas as pl
from jax.experimental.pallas import tpu as pltpu

_K = 100      # logits per head (CIFAR-100)
_K_PAD = 128  # lane-padded reduction dim per head
_N = 100      # Conv1d output channels
_N_PAD = 128  # lane-padded output channels


# ----------------------------------------------------------------------------
# Pallas kernel: fused "cat + Conv1d(200->100, k=1)" as two accumulating dots.
# ----------------------------------------------------------------------------
def ensemble_head_kernel(p1_ref, p2_ref, w1_ref, w2_ref, b_ref, o_ref):
    # p1_ref/p2_ref: (TB, 128) bf16; w1_ref/w2_ref: (128, 128) bf16
    # b_ref: (1, 128) f32; o_ref: (TB, 128) f32
    y = jnp.dot(p1_ref[...], w1_ref[...], preferred_element_type=jnp.float32)
    y = y + jnp.dot(p2_ref[...], w2_ref[...], preferred_element_type=jnp.float32)
    o_ref[...] = y + b_ref[...]


def _pad2d(x, rows, cols):
    r, c = x.shape
    return jnp.pad(x, ((0, rows - r), (0, cols - c)))


def ensemble_head(p1, p2, conv_w, conv_b, *, max_batch_tile=512):
    """cat(p1,p2) @ conv_w.T + conv_b  via a single batch-tiled Pallas call."""
    B = p1.shape[0]

    # Batch padding / tiling: sublane-aligned (multiple of 8), TB <= 512.
    b_pad = -(-B // 8) * 8
    tb = min(max_batch_tile, b_pad)
    b_pad = -(-b_pad // tb) * tb           # make b_pad a multiple of tb
    grid = (b_pad // tb,)

    # Pre-transposed, split, zero-padded weights (one-time wrapper cost).
    w1t = _pad2d(conv_w[:, :_K].T, _K_PAD, _N_PAD).astype(jnp.bfloat16)   # (128,128)
    w2t = _pad2d(conv_w[:, _K:].T, _K_PAD, _N_PAD).astype(jnp.bfloat16)   # (128,128)
    bias = jnp.pad(conv_b.astype(jnp.float32), (0, _N_PAD - _N)).reshape(1, _N_PAD)

    # bf16 activations, zero-padded to (b_pad, 128).
    p1p = _pad2d(p1.astype(jnp.bfloat16), b_pad, _K_PAD)
    p2p = _pad2d(p2.astype(jnp.bfloat16), b_pad, _K_PAD)

    cost = pl.CostEstimate(
        flops=2 * b_pad * (2 * _K_PAD) * _N_PAD,
        transcendentals=0,
        bytes_accessed=(2 * b_pad * _K_PAD * 2      # p1, p2 (bf16)
                        + 2 * _K_PAD * _N_PAD * 2   # W1t, W2t (bf16)
                        + _N_PAD * 4                # bias
                        + b_pad * _N_PAD * 4),      # output
    )

    out = pl.pallas_call(
        ensemble_head_kernel,
        out_shape=jax.ShapeDtypeStruct((b_pad, _N_PAD), jnp.float32),
        grid_spec=pltpu.PrefetchScalarGridSpec(
            num_scalar_prefetch=0,
            grid=grid,
            in_specs=[
                pl.BlockSpec((tb, _K_PAD), lambda i: (i, 0)),      # p1 tile (streams)
                pl.BlockSpec((tb, _K_PAD), lambda i: (i, 0)),      # p2 tile (streams)
                pl.BlockSpec((_K_PAD, _N_PAD), lambda i: (0, 0)),  # W1t (resident)
                pl.BlockSpec((_K_PAD, _N_PAD), lambda i: (0, 0)),  # W2t (resident)
                pl.BlockSpec((1, _N_PAD), lambda i: (0, 0)),       # bias (resident)
            ],
            out_specs=pl.BlockSpec((tb, _N_PAD), lambda i: (i, 0)),
        ),
        compiler_params=pltpu.CompilerParams(
            dimension_semantics=("parallel",),   # shard batch tiles across v7x TCs
        ),
        cost_estimate=cost,
    )(p1p, p2p, w1t, w2t, bias)

    return out[:B, :_N]


# ----------------------------------------------------------------------------
# Deterministic parameter / surrogate-bignet setup (plain JAX glue).
# ----------------------------------------------------------------------------
def init_params(key, in_features):
    k_w, k_b, k_h1, k_h2 = jax.random.split(key, 4)
    # nn.Conv1d(200, 100, 1): weight (100, 200, 1) -> (100, 200), bias (100,)
    fan_in = 200
    bound = 1.0 / math.sqrt(fan_in)
    conv_w = jax.random.uniform(k_w, (100, 200), jnp.float32, -bound, bound)
    conv_b = jax.random.uniform(k_b, (100,), jnp.float32, -bound, bound)
    # surrogate bignet: two linear heads (in_features -> 100)
    h_bound = 1.0 / math.sqrt(in_features)
    head1_w = jax.random.uniform(k_h1, (in_features, 100), jnp.float32, -h_bound, h_bound)
    head2_w = jax.random.uniform(k_h2, (in_features, 100), jnp.float32, -h_bound, h_bound)
    return conv_w, conv_b, head1_w, head2_w


def synthetic_bignet(x, head1_w, head2_w):
    # x: (B, C, H, W) NCHW -> flatten -> two 100-way heads (frozen / no grad).
    B = x.shape[0]
    feats = x.reshape(B, -1)
    p1 = feats @ head1_w
    p2 = feats @ head2_w
    return (p1, None), (p2, None)


def ensemble_net_forward(x, conv_w, conv_b, head1_w, head2_w):
    (p1, _), (p2, _) = synthetic_bignet(jax.lax.stop_gradient(x), head1_w, head2_w)
    p = ensemble_head(p1, p2, conv_w, conv_b)
    return (p, 0)


if __name__ == "__main__":
    key = jax.random.PRNGKey(0)
    k_x, k_p = jax.random.split(key)

    # Small CIFAR-like input, NCHW: batch=2, channels=3, spatial=8
    x = jax.random.normal(k_x, (2, 3, 8, 8), dtype=jnp.float32)
    conv_w, conv_b, head1_w, head2_w = init_params(k_p, in_features=3 * 8 * 8)

    out, zero = ensemble_net_forward(x, conv_w, conv_b, head1_w, head2_w)
    out = jax.block_until_ready(out)

    # References (plain JAX): cat + 1x1 conv == linear.
    (p1, _), (p2, _) = synthetic_bignet(x, head1_w, head2_w)
    p_cat = jnp.concatenate([p1, p2], axis=1)
    # (a) same-precision reference: bf16 operands, f32 accumulation (matches kernel)
    ref_bf16 = jnp.dot(p_cat.astype(jnp.bfloat16), conv_w.T.astype(jnp.bfloat16),
                       preferred_element_type=jnp.float32) + conv_b
    # (b) full-f32 reference (module semantics), looser tolerance for bf16 inputs
    ref_f32 = p_cat @ conv_w.T + conv_b

    assert out.shape == (2, 100)
    assert zero == 0
    assert jnp.allclose(out, ref_bf16, atol=2e-3, rtol=2e-3)
    assert jnp.allclose(out, ref_f32, atol=5e-2, rtol=5e-2)

    print("KERNEL_OK")
</pallas_src>

<mosaic_0001>
module attributes {stable_mosaic.version = 11 : i64} {
  func.func @ensemble_head_kernel(%arg0: i32, %arg1: memref<8x128xbf16, #tpu.memory_space<vmem>>, %arg2: memref<8x128xbf16, #tpu.memory_space<vmem>>, %arg3: memref<128x128xbf16, #tpu.memory_space<vmem>>, %arg4: memref<128x128xbf16, #tpu.memory_space<vmem>>, %arg5: memref<1x128xf32, #tpu.memory_space<vmem>>, %arg6: memref<8x128xf32, #tpu.memory_space<vmem>>) attributes {dimension_semantics = [#tpu.dimension_semantics<parallel>], iteration_bounds = array<i64: 1>, scalar_prefetch = 0 : i64, scratch_operands = 0 : i64, tpu.core_type = #tpu.core_type<tc>, window_params = [{transform_indices = @transform_0, window_bounds = array<i64: 8, 128>}, {transform_indices = @transform_1, window_bounds = array<i64: 8, 128>}, {pipeline_mode = #tpu.pipeline_mode<synchronous>, transform_indices = @transform_2, window_bounds = array<i64: 128, 128>}, {pipeline_mode = #tpu.pipeline_mode<synchronous>, transform_indices = @transform_3, window_bounds = array<i64: 128, 128>}, {pipeline_mode = #tpu.pipeline_mode<synchronous>, transform_indices = @transform_4, window_bounds = array<i64: 1, 128>}, {transform_indices = @transform_5, window_bounds = array<i64: 8, 128>}]} {
    %c0 = arith.constant 0 : index
    %c0_0 = arith.constant 0 : index
    %0 = vector.load %arg1[%c0, %c0_0] : memref<8x128xbf16, #tpu.memory_space<vmem>>, vector<8x128xbf16>
    %c0_1 = arith.constant 0 : index
    %c0_2 = arith.constant 0 : index
    %1 = vector.load %arg3[%c0_1, %c0_2] : memref<128x128xbf16, #tpu.memory_space<vmem>>, vector<128x128xbf16>
    %cst = arith.constant dense<0.000000e+00> : vector<8x128xf32>
    %2 = tpu.matmul %0, %1, %cst {dimension_numbers = #tpu.dot_dimension_numbers<[1], [0], [0], [1], [0, 0, 1, 1], [], []>} : vector<8x128xbf16>, vector<128x128xbf16>, vector<8x128xf32> -> vector<8x128xf32>
    %c0_3 = arith.constant 0 : index
    %c0_4 = arith.constant 0 : index
    %3 = vector.load %arg2[%c0_3, %c0_4] : memref<8x128xbf16, #tpu.memory_space<vmem>>, vector<8x128xbf16>
    %c0_5 = arith.constant 0 : index
    %c0_6 = arith.constant 0 : index
    %4 = vector.load %arg4[%c0_5, %c0_6] : memref<128x128xbf16, #tpu.memory_space<vmem>>, vector<128x128xbf16>
    %cst_7 = arith.constant dense<0.000000e+00> : vector<8x128xf32>
    %5 = tpu.matmul %3, %4, %cst_7 {dimension_numbers = #tpu.dot_dimension_numbers<[1], [0], [0], [1], [0, 0, 1, 1], [], []>} : vector<8x128xbf16>, vector<128x128xbf16>, vector<8x128xf32> -> vector<8x128xf32>
    %6 = arith.addf %2, %5 : vector<8x128xf32>
    %c0_8 = arith.constant 0 : index
    %c0_9 = arith.constant 0 : index
    %7 = vector.load %arg5[%c0_8, %c0_9] : memref<1x128xf32, #tpu.memory_space<vmem>>, vector<1x128xf32>
    %8 = vector.broadcast %7 : vector<1x128xf32> to vector<8x128xf32>
    %9 = arith.addf %6, %8 : vector<8x128xf32>
    %c0_10 = arith.constant 0 : index
    %c0_11 = arith.constant 0 : index
    %10 = vector.load %arg6[%c0_10, %c0_11] : memref<8x128xf32, #tpu.memory_space<vmem>>, vector<8x128xf32>
    tpu.vector_store %arg6[%c0_10, %c0_11], %9 {strides = array<i32>} : memref<8x128xf32, #tpu.memory_space<vmem>>, vector<8x128xf32>,
    return
  }
  func.func @transform_0(%arg0: i32) -> (i32, i32) {
    %c0_i32 = arith.constant 0 : i32
    %c0_i32_0 = arith.constant 0 : i32
    return %arg0, %c0_i32 : i32, i32
  }
  func.func @transform_1(%arg0: i32) -> (i32, i32) {
    %c0_i32 = arith.constant 0 : i32
    %c0_i32_0 = arith.constant 0 : i32
    return %arg0, %c0_i32 : i32, i32
  }
  func.func @transform_2(%arg0: i32) -> (i32, i32) {
    %c0_i32 = arith.constant 0 : i32
    %c0_i32_0 = arith.constant 0 : i32
    %c0_i32_1 = arith.constant 0 : i32
    return %c0_i32, %c0_i32_0 : i32, i32
  }
  func.func @transform_3(%arg0: i32) -> (i32, i32) {
    %c0_i32 = arith.constant 0 : i32
    %c0_i32_0 = arith.constant 0 : i32
    %c0_i32_1 = arith.constant 0 : i32
    return %c0_i32, %c0_i32_0 : i32, i32
  }
  func.func @transform_4(%arg0: i32) -> (i32, i32) {
    %c0_i32 = arith.constant 0 : i32
    %c0_i32_0 = arith.constant 0 : i32
    %c0_i32_1 = arith.constant 0 : i32
    return %c0_i32, %c0_i32_0 : i32, i32
  }
  func.func @transform_5(%arg0: i32) -> (i32, i32) {
    %c0_i32 = arith.constant 0 : i32
    %c0_i32_0 = arith.constant 0 : i32
    return %arg0, %c0_i32 : i32, i32
  }
}

</mosaic_0001>

<bundles_post_ra>
// kernel: tpu_custom_call.1
= control target key start
LH: loop header
LB: loop body
LE: loop exit
PB: predicated region body
PF: predicated region fallthrough
CT: control target
= control target key end

     0   :  { %10 = vsyncpa [#allocation3], 0  ;;  %s574_s0 = inlined_call_operand.hbm [shape: bf16[8,128], index: 0, kind: input, shape index: {}]   ;;  %s575_s1 = inlined_call_operand.hbm [shape: bf16[8,128], index: 1, kind: input, shape index: {}]   ;;  %s576_s2 = inlined_call_operand.hbm [shape: bf16[128,128], index: 2, kind: input, shape index: {}]   ;;  %s577_s3 = inlined_call_operand.hbm [shape: bf16[128,128], index: 3, kind: input, shape index: {}]   ;;  %s578_s4 = inlined_call_operand.vmem [shape: f32[1,128], index: 4, kind: input, shape index: {}]   ;;  %s579_s5 = inlined_call_operand.hbm [shape: f32[8,128], index: 5, kind: output, shape index: {}]  }
   0x1   :  { %11 = vsyncpa [#allocation6], 0 }
   0x2   :  { %12 = vsyncpa [#allocation9], 0 }
   0x3   :  { %13 = vsyncpa [#allocation4], 0  ;;  %s517_s18 = smov [#allocation5]   ;;  %s518_s20 = smov [#allocation2]  }
   0x4   :  { %s30_s19 = sshll.u32 %s517_s18, 4  ;;  %s20_s21 = sshll.u32 %s518_s20, 4  ;;  %s31_s19 = int_to_ptr.vmem [resolvable:$true] %s30_s19  ;;  %s21_s21 = int_to_ptr.vmem [resolvable:$true] %s20_s21 }
   0x5   :  { %s417_s22 = scalar_lea.vmem %s31_s19, 64  ;;  %p422_p1 = scmp.lt.s32.totalorder %s31_s19, %s31_s19 }
   0x6   :  { %p418_p0 = scmp.ne.s32.totalorder %s31_s19, %s417_s22  ;;  %p423_p2 = scmp.lt.s32.totalorder %s417_s22, %s417_s22 }
   0x8   :  { %p424_p3 = por %p423_p2, %p422_p1 }
   0xa   :  { %p425_p4 = pnand %p424_p3, %p418_p0 }
   0xc   :  { %428 = shalt.err (!%p425_p4)
}
   0xd   :  { %33 = dma.hbm_to_vmem [thread:$0]  %s575_s1, 64, %s31_s19, [#allocation6]  }
   0xe   :  { %s437_s25 = scalar_lea.vmem %s21_s21, 64  ;;  %p442_p6 = scmp.lt.s32.totalorder %s21_s21, %s21_s21 }
   0xf   :  { %p438_p5 = scmp.ne.s32.totalorder %s21_s21, %s437_s25  ;;  %p443_p7 = scmp.lt.s32.totalorder %s437_s25, %s437_s25 }
  0x11   :  { %p444_p8 = por %p443_p7, %p442_p6 }
  0x13   :  { %p445_p9 = pnand %p444_p8, %p438_p5 }
  0x15   :  { %448 = shalt.err (!%p445_p9)
}
  0x16   :  { %23 = dma.hbm_to_vmem [thread:$0]  %s574_s0, 64, %s21_s21, [#allocation3]  }
  0x17   :  { %s519_s28 = smov [#allocation7]  }
  0x18   :  { %s39_s29 = sshll.u32 %s519_s28, 4  ;;  %s40_s29 = int_to_ptr.vmem [resolvable:$true] %s39_s29 }
  0x19   :  { %s457_s30 = scalar_lea.vmem %s40_s29, 1024  ;;  %p462_p11 = scmp.lt.s32.totalorder %s40_s29, %s40_s29 }
  0x1a   :  { %p458_p10 = scmp.ne.s32.totalorder %s40_s29, %s457_s30  ;;  %p463_p12 = scmp.lt.s32.totalorder %s457_s30, %s457_s30 }
  0x1c   :  { %p464_p13 = por %p463_p12, %p462_p11 }
  0x1e   :  { %p465_p0 = pnand %p464_p13, %p458_p10 }
  0x20   :  { %468 = shalt.err (!%p465_p0)
}
  0x21   :  { %s520_s1 = smov 64   ;;  %s521_s6 = smov 4  }
  0x22   :  { %45 = dma.hbm_to_vmem [thread:$0]  %s576_s2, 1024, %s40_s29, [#allocation6], %s520_s1, %s520_s1, %s521_s6  }
  0x23   :  { %s522_s9 = smov [#allocation8]  }
  0x24   :  { %s51_s10 = sshll.u32 %s522_s9, 4  ;;  %s52_s10 = int_to_ptr.vmem [resolvable:$true] %s51_s10 }
  0x25   :  { %s477_s0 = scalar_lea.vmem %s52_s10, 1024  ;;  %p482_p2 = scmp.lt.s32.totalorder %s52_s10, %s52_s10 }
  0x26   :  { %p478_p1 = scmp.ne.s32.totalorder %s52_s10, %s477_s0  ;;  %p483_p3 = scmp.lt.s32.totalorder %s477_s0, %s477_s0 }
  0x28   :  { %p484_p4 = por %p483_p3, %p482_p2 }
  0x2a   :  { %p485_p5 = pnand %p484_p4, %p478_p1 }
  0x2c   :  { %488 = shalt.err (!%p485_p5)
}
  0x2d   :  { %57 = dma.hbm_to_vmem [thread:$0]  %s577_s3, 1024, %s52_s10, [#allocation9], %s520_s1, %s520_s1, %s521_s6  }
  0x2e   :  { %509 = dma.done.wait [#allocation3], 64  }
  0x2f   :  { %510 = vsyncadd [#allocation3], 4294967232 }
  0x30   :  { %511 = dma.done.wait [#allocation6], 1088  }
  0x31   :  { %512 = vsyncadd [#allocation6], 4294966208 }
  0x32   :  { %513 = dma.done.wait [#allocation9], 1024  }
  0x33   :  { %514 = vsyncadd [#allocation9], 4294966272  ;;  %v523_v0 = vmov 0.0   ;;  %vm524_vm0 = vmmov 0   ;;  %v393_v1 = vld [vmem:[#allocation8 + $0x38] sm:$0xff]   ;;  %v395_v3 = vld [vmem:[#allocation8 + $0x30] sm:$0xff]  }
  0x34   :  { %344 = vmatprep.subr.bf16.mxu0 %v523_v0  ;;  %364 = vmatprep.subr.bf16.mxu1 %v523_v0  ;;  %v394_v2 = vld [vmem:[#allocation7 + $0x38] sm:$0xff]   ;;  %v396_v4 = vld [vmem:[#allocation7 + $0x30] sm:$0xff]   ;;  %v397_v5 = vld [vmem:[#allocation8 + $0x28] sm:$0xff]   ;;  %s525_s13 = smov [#allocation10]  }
  0x35   :  { %360 = vmatprep.mubr.msk.bf16.mxu0 %vm524_vm0, %v523_v0  ;;  %380 = vmatprep.mubr.msk.bf16.mxu1 %vm524_vm0, %v523_v0  ;;  %v398_v6 = vld [vmem:[#allocation7 + $0x28] sm:$0xff]   ;;  %v399_v7 = vld [vmem:[#allocation8 + $0x20] sm:$0xff]   ;;  %v401_v9 = vld [vmem:[#allocation8 + $0x18] sm:$0xff]   ;;  %s298_s14 = sshll.u32 %s525_s13, 4  ;;  %s299_s14 = int_to_ptr.vmem [resolvable:$true] %s298_s14 }
  0x36   :  { %345 = vmatpush3.bf16.msra.mxu0 %v393_v1  ;;  %365 = vmatpush3.bf16.msra.mxu1 %v394_v2  ;;  %v400_v8 = vld [vmem:[#allocation7 + $0x20] sm:$0xff]   ;;  %v402_v10 = vld [vmem:[#allocation7 + $0x18] sm:$0xff]   ;;  %v403_v11 = vld [vmem:[#allocation8 + $0x10] sm:$0xff]   ;;  %s489_s15 = scalar_lea.vmem %s299_s14, 128  ;;  %p494_p7 = scmp.lt.s32.totalorder %s299_s14, %s299_s14 }
  0x37   :  { %346 = vmatprep.subr.bf16.mxu0 %v523_v0  ;;  %366 = vmatprep.subr.bf16.mxu1 %v523_v0  ;;  %v404_v12 = vld [vmem:[#allocation7 + $0x10] sm:$0xff]   ;;  %v405_v13 = vld [vmem:[#allocation8 + $0x8] sm:$0xff]   ;;  %v407_v15 = vld [vmem:[#allocation8] sm:$0xff]   ;;  %p490_p6 = scmp.ne.s32.totalorder %s299_s14, %s489_s15  ;;  %p495_p8 = scmp.lt.s32.totalorder %s489_s15, %s489_s15 }
  0x38   :  { %v406_v14 = vld [vmem:[#allocation7 + $0x8] sm:$0xff]   ;;  %v408_v16 = vld [vmem:[#allocation7] sm:$0xff]   ;;  %v90_v17 = vld [vmem:[#allocation5] sm:$0xf] }
  0x39   :  { %v73_v18 = vld [vmem:[#allocation2] sm:$0xf]  ;;  %p496_p9 = por %p495_p8, %p494_p7 }
  0x3a   :  { %347 = vmatpush3.bf16.msra.mxu0 %v395_v3  ;;  %367 = vmatpush3.bf16.msra.mxu1 %v396_v4  ;;  %v325_v21 = vld [vmem:[%s578_s4] ss:$0 sm:$0xff] }
  0x3b   :  { %348 = vmatprep.subr.bf16.mxu0 %v523_v0  ;;  %368 = vmatprep.subr.bf16.mxu1 %v523_v0  ;;  %p497_p10 = pnand %p496_p9, %p490_p6 }
  0x3e   :  { %349 = vmatpush3.bf16.msra.mxu0 %v397_v5  ;;  %369 = vmatpush3.bf16.msra.mxu1 %v398_v6 }
  0x3f   :  { %350 = vmatprep.subr.bf16.mxu0 %v523_v0  ;;  %370 = vmatprep.subr.bf16.mxu1 %v523_v0 }
  0x42   :  { %351 = vmatpush3.bf16.msra.mxu0 %v399_v7  ;;  %371 = vmatpush3.bf16.msra.mxu1 %v400_v8 }
  0x43   :  { %352 = vmatprep.subr.bf16.mxu0 %v523_v0  ;;  %372 = vmatprep.subr.bf16.mxu1 %v523_v0 }
  0x46   :  { %353 = vmatpush3.bf16.msra.mxu0 %v401_v9  ;;  %373 = vmatpush3.bf16.msra.mxu1 %v402_v10 }
  0x47   :  { %354 = vmatprep.subr.bf16.mxu0 %v523_v0  ;;  %374 = vmatprep.subr.bf16.mxu1 %v523_v0 }
  0x4a   :  { %355 = vmatpush3.bf16.msra.mxu0 %v403_v11  ;;  %375 = vmatpush3.bf16.msra.mxu1 %v404_v12 }
  0x4b   :  { %356 = vmatprep.subr.bf16.mxu0 %v523_v0  ;;  %376 = vmatprep.subr.bf16.mxu1 %v523_v0 }
  0x4e   :  { %357 = vmatpush3.bf16.msra.mxu0 %v405_v13  ;;  %377 = vmatpush3.bf16.msra.mxu1 %v406_v14 }
  0x4f   :  { %358 = vmatprep.subr.bf16.mxu0 %v523_v0  ;;  %378 = vmatprep.subr.bf16.mxu1 %v523_v0 }
  0x52   :  { %359 = vmatpush3.bf16.msra.mxu0 %v407_v15  ;;  %379 = vmatpush3.bf16.msra.mxu1 %v408_v16 }
  0x55   :  { %361 = vmatmul.mubr.bf16.vlgmr.msra.gmra.mxu0 %v90_v17  ;;  %381 = vmatmul.mubr.bf16.vlgmr.msra.gmra.mxu1 %v73_v18 }
 0x115   :  { %v189_v19 = vpop.f32.mrf.mxu0  ;;  %v277_v20 = vpop.f32.mrf.mxu1 }
 0x116   :  { %v278_v22 = vadd.f32 %v277_v20, %v189_v19 }
 0x117   :  { %v362_v23 = vpop.f32.mrf.mxu0  ;;  %v382_v24 = vpop.f32.mrf.mxu1 }
 0x118   :  { %v290_v25 = vadd.f32 %v325_v21, %v278_v22 }
 0x119   :  { %v192_v26 = vpop.f32.mrf.mxu0  ;;  %v280_v27 = vpop.f32.mrf.mxu1 }
 0x11a   :  { %291 = vst [vmem:[#allocation10] sm:$0xff] %v290_v25 }
 0x11b   :  { %v363_v28 = vpop.f32.mrf.mxu0  ;;  %v383_v29 = vpop.f32.mrf.mxu1 }
 0x11c   :  { %500 = shalt.err (!%p497_p10)
}
 0x11d   :  { %301 = dma.vmem_to_hbm [thread:$0]  %s299_s14, 128, %s579_s5, [#allocation4]  }
 0x11e   :  { %515 = dma.done.wait [#allocation4], 128  }
 0x11f   :  { %516 = vsyncadd [#allocation4], 4294967168 }
 0x120   :  { %305 = vsyncpa [#allocation3], 1 }
 0x121   :  { %306 = vsyncpa [#allocation6], 1 }
 0x122   :  { %307 = vsyncpa [#allocation9], 1 }
 0x123   :  { %308 = vsyncpa [#allocation4], 1 }

</bundles_post_ra>
